<compile_context>
chip_gen: v6e
topology: v6e:2x2x1
jax: 0.10.0
libtpu: 0.0.40
codegen_flags: <defaults>
</compile_context>

<pallas_src>
import jax
import jax.numpy as jnp
import numpy as np
from jax import lax
from jax.experimental import pallas as pl
from jax.experimental.pallas import tpu as pltpu

EPS = 1e-5
MOMENTUM = 0.01
R_D_MAX_INC_STEP = 1e-4
MAX_R_MAX = 3.0
MAX_D_MAX = 5.0


def _vmem_limit_bytes():
    """Generation-aware scoped-VMEM request (leave ~25% physical headroom)."""
    cap = 128 * 1024 * 1024
    try:
        cap = int(pltpu.get_tpu_info().vmem_capacity_bytes)
    except Exception:
        pass  # fall back to a conservative 128 MiB physical assumption
    return int(max(16 * 1024 * 1024, min(cap * 3 // 4, 96 * 1024 * 1024)))


def _pick_tiles(n, c, m, itemsize, vmem_limit):
    """Pick (n_blk, m_tile).

    Tiles target ~8 MiB (bounded by vmem_limit/6 so the normalize pass'
    double-buffered in+out stays well under the scoped limit).  m_tile does
    NOT have to divide M (cdiv + lane masking).  When the whole M axis fits
    in one block, several batch elements are grouped per grid step.
    """
    c_pad = ((c + 7) // 8) * 8
    row_bytes = c_pad * itemsize
    tile_budget = max(512 * 1024, min(8 * 1024 * 1024, vmem_limit // 6))
    if m * row_bytes <= tile_budget:
        m_tile = m                                   # whole contiguous M axis
        cap = max(1, tile_budget // max(1, m * row_bytes))
        n_blk = 1
        for d in range(1, min(cap, n) + 1):          # largest divisor of N
            if n % d == 0:
                n_blk = d
    else:
        n_blk = 1
        lanes = (tile_budget // row_bytes) // 128 * 128
        m_tile = int(max(128, lanes))
    return int(n_blk), int(m_tile)


def _make_stats_kernel(m_total, m_tile, needs_mask):
    """Per-channel shifted sum / sum-of-squares over the (N-groups, M) grid."""

    def kernel(x_ref, rm_ref, sum_ref, sumsq_ref):
        @pl.when(pl.program_id(1) == 0)
        def _():
            sum_ref[...] = jnp.zeros_like(sum_ref)
            sumsq_ref[...] = jnp.zeros_like(sumsq_ref)

        x = x_ref[...].astype(jnp.float32)           # (n_blk, C, m_tile)
        xm = x - rm_ref[...][None]                   # shift by running_mean
        if needs_mask:                               # only built if M % m_tile != 0
            lane = lax.broadcasted_iota(jnp.int32, x.shape, 2)
            valid = (pl.program_id(1) * m_tile + lane) < m_total
            xm = jnp.where(valid, xm, 0.0)           # select, no NaN propagation
        sum_ref[...] += jnp.sum(xm, axis=(0, 2), keepdims=True)
        sumsq_ref[...] += jnp.sum(xm * xm, axis=(0, 2), keepdims=True)

    return kernel


def _norm_kernel(x_ref, scale_ref, shift_ref, out_ref):
    """out = x * scale + shift  (per-channel (C,1) scale/shift, lane-dense)."""
    x = x_ref[...].astype(jnp.float32)               # (n_blk, C, m_tile)
    out_ref[...] = (x * scale_ref[...][None]
                    + shift_ref[...][None]).astype(out_ref.dtype)


def batch_renorm3d_train(x, gamma, beta, running_mean, running_std,
                         r_max, d_max):
    """Training-mode forward of BatchRenormalization3D.

    Returns (out, new_running_mean, new_running_std, new_r_max, new_d_max).
    """
    N, C, T, H, W = x.shape
    M = T * H * W
    x3 = x.reshape(N, C, M)                          # free (contiguous) reshape

    itemsize = jnp.dtype(x.dtype).itemsize
    vmem_limit = _vmem_limit_bytes()
    n_blk, m_tile = _pick_tiles(N, C, M, itemsize, vmem_limit)
    ng = N // n_blk
    mg = pl.cdiv(M, m_tile)
    grid = (ng, mg)

    g = gamma.reshape(C, 1).astype(jnp.float32)
    b = beta.reshape(C, 1).astype(jnp.float32)
    rm = running_mean.reshape(C, 1).astype(jnp.float32)
    rs = running_std.reshape(C, 1).astype(jnp.float32)

    x_spec = pl.BlockSpec((n_blk, C, m_tile), lambda n, m: (n, 0, m))
    vec_spec = pl.BlockSpec((C, 1), lambda n, m: (0, 0))
    part_spec = pl.BlockSpec((1, C, 1), lambda n, m: (n, 0, 0))

    elems = N * C * M
    stats_cost = pl.CostEstimate(flops=4 * elems, transcendentals=0,
                                 bytes_accessed=elems * itemsize + 4 * C * 3)
    norm_cost = pl.CostEstimate(flops=2 * elems, transcendentals=0,
                                bytes_accessed=2 * elems * itemsize + 4 * C * 2)

    # --- pass 1: per-channel shifted sum / sum-of-squares (per-N partials) --
    part_sum, part_sumsq = pl.pallas_call(
        _make_stats_kernel(M, m_tile, (M % m_tile) != 0),
        out_shape=(jax.ShapeDtypeStruct((ng, C, 1), jnp.float32),
                   jax.ShapeDtypeStruct((ng, C, 1), jnp.float32)),
        grid_spec=pltpu.PrefetchScalarGridSpec(
            num_scalar_prefetch=0,
            grid=grid,
            in_specs=[x_spec, vec_spec],
            out_specs=(part_spec, part_spec)),
        compiler_params=pltpu.CompilerParams(
            dimension_semantics=("parallel", "arbitrary"),
            vmem_limit_bytes=vmem_limit),
        cost_estimate=stats_cost,
    )(x3, rm)

    # --- tiny per-channel math ((C,1) vectors, plain JAX glue) --------------
    count = N * M
    s1 = jnp.sum(part_sum, axis=0)                   # (C, 1)  sum(x - rm)
    s2 = jnp.sum(part_sumsq, axis=0)                 # (C, 1)  sum((x - rm)^2)
    mean = rm + s1 / jnp.float32(count)
    denom = jnp.float32(count - 1 if count > 1 else 1)   # torch.std is unbiased
    var = (s2 - s1 * s1 / jnp.float32(count)) / denom    # shifted formula
    var = jnp.maximum(var, 0.0)
    std = jnp.clip(jnp.sqrt(var), EPS, 1e10)         # torch.clamp(std, eps, 1e10)

    # torch divides by running_avg_std unclamped; clamp to eps so a zero /
    # equal-mean channel yields 0 (then clipped) instead of NaN.  Identical to
    # torch for the module's own initial state (r_max=1, d_max=0).
    rs_safe = jnp.maximum(rs, EPS)
    r = jnp.clip(std / rs_safe, 1.0 / r_max, r_max)  # stop-grad consts in torch
    d = jnp.clip((mean - rm) / rs_safe, -d_max, d_max)

    inv_std = 1.0 / std
    scale = g * r * inv_std                          # (C, 1)
    shift = g * (d - mean * r * inv_std) + b         # (C, 1)

    # --- pass 2: lane-dense normalize: out = x * scale + shift --------------
    out3 = pl.pallas_call(
        _norm_kernel,
        out_shape=jax.ShapeDtypeStruct((N, C, M), x.dtype),
        grid_spec=pltpu.PrefetchScalarGridSpec(
            num_scalar_prefetch=0,
            grid=grid,
            in_specs=[x_spec, vec_spec, vec_spec],
            out_specs=pl.BlockSpec((n_blk, C, m_tile), lambda n, m: (n, 0, m))),
        compiler_params=pltpu.CompilerParams(
            dimension_semantics=("parallel", "parallel"),
            vmem_limit_bytes=vmem_limit),
        cost_estimate=norm_cost,
    )(x3, scale, shift)

    out = out3.reshape(N, C, T, H, W)                # free reshape back

    # Stateful bookkeeping of the PyTorch module, returned functionally
    # (in-place .add_ / r_max,d_max buffer increments have no Pallas analog).
    new_rm = (rm + MOMENTUM * (mean - rm)).reshape(1, C, 1, 1, 1)
    new_rs = (rs + MOMENTUM * (std - rs)).reshape(1, C, 1, 1, 1)
    new_rmax = jnp.where(r_max < MAX_R_MAX, r_max + R_D_MAX_INC_STEP * N, r_max)
    new_dmax = jnp.where(d_max < MAX_D_MAX, d_max + R_D_MAX_INC_STEP * N, d_max)
    return out, new_rm, new_rs, new_rmax, new_dmax


def _reference(x, gamma, beta, running_mean, running_std, r_max, d_max):
    """Pure-JAX reference mirroring the PyTorch training forward."""
    xf = x.astype(jnp.float32)
    mean = jnp.mean(xf, axis=(0, 2, 3, 4), keepdims=True)
    n = x.shape[0] * x.shape[2] * x.shape[3] * x.shape[4]
    var = jnp.sum((xf - mean) ** 2, axis=(0, 2, 3, 4), keepdims=True) / (n - 1)
    std = jnp.clip(jnp.sqrt(var), EPS, 1e10)
    r = jnp.clip(std / running_std, 1.0 / r_max, r_max)
    d = jnp.clip((mean - running_mean) / running_std, -d_max, d_max)
    y = (xf - mean) * r / std + d
    return gamma * y + beta


if __name__ == "__main__":
    key = jax.random.PRNGKey(0)
    N, C, T, H, W = 2, 4, 4, 8, 8

    x = jax.random.normal(key, (N, C, T, H, W), dtype=jnp.float32)

    # Deterministic parameter init, exactly as in the module's __init__:
    gamma = jnp.ones((1, C, 1, 1, 1), jnp.float32)
    beta = jnp.zeros((1, C, 1, 1, 1), jnp.float32)
    running_avg_mean = jnp.ones((1, C, 1, 1, 1), jnp.float32)
    running_avg_std = jnp.zeros((1, C, 1, 1, 1), jnp.float32)
    r_max = jnp.float32(1.0)
    d_max = jnp.float32(0.0)

    out, new_rm, new_rs, new_rmax, new_dmax = batch_renorm3d_train(
        x, gamma, beta, running_avg_mean, running_avg_std, r_max, d_max)
    jax.block_until_ready(out)

    ref = _reference(x, gamma, beta, running_avg_mean, running_avg_std,
                     r_max, d_max)
    np.testing.assert_allclose(np.asarray(out), np.asarray(ref),
                               rtol=2e-5, atol=2e-5)
    assert out.shape == (N, C, T, H, W)
    print("KERNEL_OK")
</pallas_src>

<mosaic_0001>
module attributes {stable_mosaic.version = 11 : i64} {
  func.func @kernel(%arg0: i32, %arg1: i32, %arg2: memref<2x4x256xf32, #tpu.memory_space<vmem>>, %arg3: memref<4x1xf32, #tpu.memory_space<vmem>>, %arg4: memref<1x4x1xf32, #tpu.memory_space<vmem>>, %arg5: memref<1x4x1xf32, #tpu.memory_space<vmem>>) attributes {dimension_semantics = [#tpu.dimension_semantics<parallel>, #tpu.dimension_semantics<arbitrary>], iteration_bounds = array<i64: 1, 1>, scalar_prefetch = 0 : i64, scratch_operands = 0 : i64, tpu.core_type = #tpu.core_type<tc>, window_params = [{transform_indices = @transform_0, window_bounds = array<i64: 2, 4, 256>}, {pipeline_mode = #tpu.pipeline_mode<synchronous>, transform_indices = @transform_1, window_bounds = array<i64: 4, 1>}, {transform_indices = @transform_2, window_bounds = array<i64: 1, 4, 1>}, {transform_indices = @transform_3, window_bounds = array<i64: 1, 4, 1>}]} {
    %c0_i32 = arith.constant 0 : i32
    %0 = arith.cmpi eq, %arg1, %c0_i32 : i32
    %1 = arith.extui %0 : i1 to i32
    %c0_i32_0 = arith.constant 0 : i32
    %2 = arith.cmpi ne, %1, %c0_i32_0 : i32
    scf.if %2 {
      %cst_18 = arith.constant 0.000000e+00 : f32
      %19 = vector.broadcast %cst_18 : f32 to vector<1x4x1xf32>
      %c0_19 = arith.constant 0 : index
      %c0_20 = arith.constant 0 : index
      %c0_21 = arith.constant 0 : index
      %20 = vector.load %arg4[%c0_19, %c0_20, %c0_21] : memref<1x4x1xf32, #tpu.memory_space<vmem>>, vector<1x4x1xf32>
      tpu.vector_store %arg4[%c0_19, %c0_20, %c0_21], %19 {strides = array<i32>} : memref<1x4x1xf32, #tpu.memory_space<vmem>>, vector<1x4x1xf32>,
      %cst_22 = arith.constant 0.000000e+00 : f32
      %21 = vector.broadcast %cst_22 : f32 to vector<1x4x1xf32>
      %c0_23 = arith.constant 0 : index
      %c0_24 = arith.constant 0 : index
      %c0_25 = arith.constant 0 : index
      %22 = vector.load %arg5[%c0_23, %c0_24, %c0_25] : memref<1x4x1xf32, #tpu.memory_space<vmem>>, vector<1x4x1xf32>
      tpu.vector_store %arg5[%c0_23, %c0_24, %c0_25], %21 {strides = array<i32>} : memref<1x4x1xf32, #tpu.memory_space<vmem>>, vector<1x4x1xf32>,
    } else {
    }
    %c0 = arith.constant 0 : index
    %c0_1 = arith.constant 0 : index
    %c0_2 = arith.constant 0 : index
    %3 = vector.load %arg2[%c0, %c0_1, %c0_2] : memref<2x4x256xf32, #tpu.memory_space<vmem>>, vector<2x4x256xf32>
    %c0_3 = arith.constant 0 : index
    %c0_4 = arith.constant 0 : index
    %4 = vector.load %arg3[%c0_3, %c0_4] : memref<4x1xf32, #tpu.memory_space<vmem>>, vector<4x1xf32>
    %5 = vector.shape_cast %4 : vector<4x1xf32> to vector<1x4x1xf32>
    %6 = vector.broadcast %5 : vector<1x4x1xf32> to vector<2x4x256xf32>
    %7 = arith.subf %3, %6 : vector<2x4x256xf32>
    %c0_5 = arith.constant 0 : index
    %c0_6 = arith.constant 0 : index
    %c0_7 = arith.constant 0 : index
    %8 = vector.load %arg4[%c0_5, %c0_6, %c0_7] : memref<1x4x1xf32, #tpu.memory_space<vmem>>, vector<1x4x1xf32>
    %cst = arith.constant dense<0.000000e+00> : vector<4xf32>
    %9 = vector.multi_reduction <add>, %7, %cst [0, 2] : vector<2x4x256xf32> to vector<4xf32>
    %10 = vector.shape_cast %9 : vector<4xf32> to vector<1x4x1xf32>
    %11 = arith.addf %8, %10 : vector<1x4x1xf32>
    %c0_8 = arith.constant 0 : index
    %c0_9 = arith.constant 0 : index
    %c0_10 = arith.constant 0 : index
    %12 = vector.load %arg4[%c0_8, %c0_9, %c0_10] : memref<1x4x1xf32, #tpu.memory_space<vmem>>, vector<1x4x1xf32>
    tpu.vector_store %arg4[%c0_8, %c0_9, %c0_10], %11 {strides = array<i32>} : memref<1x4x1xf32, #tpu.memory_space<vmem>>, vector<1x4x1xf32>,
    %c0_11 = arith.constant 0 : index
    %c0_12 = arith.constant 0 : index
    %c0_13 = arith.constant 0 : index
    %13 = vector.load %arg5[%c0_11, %c0_12, %c0_13] : memref<1x4x1xf32, #tpu.memory_space<vmem>>, vector<1x4x1xf32>
    %14 = arith.mulf %7, %7 : vector<2x4x256xf32>
    %cst_14 = arith.constant dense<0.000000e+00> : vector<4xf32>
    %15 = vector.multi_reduction <add>, %14, %cst_14 [0, 2] : vector<2x4x256xf32> to vector<4xf32>
    %16 = vector.shape_cast %15 : vector<4xf32> to vector<1x4x1xf32>
    %17 = arith.addf %13, %16 : vector<1x4x1xf32>
    %c0_15 = arith.constant 0 : index
    %c0_16 = arith.constant 0 : index
    %c0_17 = arith.constant 0 : index
    %18 = vector.load %arg5[%c0_15, %c0_16, %c0_17] : memref<1x4x1xf32, #tpu.memory_space<vmem>>, vector<1x4x1xf32>
    tpu.vector_store %arg5[%c0_15, %c0_16, %c0_17], %17 {strides = array<i32>} : memref<1x4x1xf32, #tpu.memory_space<vmem>>, vector<1x4x1xf32>,
    return
  }
  func.func @transform_0(%arg0: i32, %arg1: i32) -> (i32, i32, i32) {
    %c0_i32 = arith.constant 0 : i32
    %c0_i32_0 = arith.constant 0 : i32
    return %arg0, %c0_i32, %arg1 : i32, i32, i32
  }
  func.func @transform_1(%arg0: i32, %arg1: i32) -> (i32, i32) {
    %c0_i32 = arith.constant 0 : i32
    %c0_i32_0 = arith.constant 0 : i32
    %c0_i32_1 = arith.constant 0 : i32
    return %c0_i32, %c0_i32_0 : i32, i32
  }
  func.func @transform_2(%arg0: i32, %arg1: i32) -> (i32, i32, i32) {
    %c0_i32 = arith.constant 0 : i32
    %c0_i32_0 = arith.constant 0 : i32
    %c0_i32_1 = arith.constant 0 : i32
    return %arg0, %c0_i32, %c0_i32_0 : i32, i32, i32
  }
  func.func @transform_3(%arg0: i32, %arg1: i32) -> (i32, i32, i32) {
    %c0_i32 = arith.constant 0 : i32
    %c0_i32_0 = arith.constant 0 : i32
    %c0_i32_1 = arith.constant 0 : i32
    return %arg0, %c0_i32, %c0_i32_0 : i32, i32, i32
  }
}

</mosaic_0001>

<bundles_post_ra>
// kernel: tpu_custom_call.1
= control target key start
LH: loop header
LB: loop body
LE: loop exit
PB: predicated region body
PF: predicated region fallthrough
CT: control target
= control target key end

     0   :  { %9 = vsyncpa [#allocation3], 0  ;;  %s129_s12 = smov [#allocation2]   ;;  %s191_s0 = inlined_call_operand.hbm [shape: f32[2,4,256], index: 0, kind: input, shape index: {}]   ;;  %s192_s1 = inlined_call_operand.vmem [shape: f32[4,1], index: 1, kind: input, shape index: {}]   ;;  %s193_s2 = inlined_call_operand.vmem [shape: f32[1,4,1], index: 2, kind: output, shape index: {0}]   ;;  %s194_s3 = inlined_call_operand.vmem [shape: f32[1,4,1], index: 3, kind: output, shape index: {1}]  }
   0x1   :  { %s15_s13 = sshll.u32 %s129_s12, 4  ;;  %s16_s13 = int_to_ptr.vmem [resolvable:$true] %s15_s13 }
   0x2   :  { %s115_s14 = scalar_lea.vmem %s16_s13, 256  ;;  %p120_p1 = scmp.lt.s32.totalorder %s16_s13, %s16_s13 }
   0x3   :  { %p116_p0 = scmp.ne.s32.totalorder %s16_s13, %s115_s14  ;;  %p121_p2 = scmp.lt.s32.totalorder %s115_s14, %s115_s14 }
   0x5   :  { %p122_p3 = por %p121_p2, %p120_p1 }
   0x7   :  { %p123_p4 = pnand %p122_p3, %p116_p0 }
   0x9   :  { %126 = shalt.err (!%p123_p4)
}
   0xa   :  { %s130_s15 = smov 128   ;;  %s131_s16 = smov 8  }
   0xb   :  { %21 = dma.hbm_to_vmem [thread:$0]  %s191_s0, 256, %s16_s13, [#allocation3], %s130_s15, %s130_s15, %s131_s16  }
   0xc   :  { %127 = dma.done.wait [#allocation3], 256  }
   0xd   :  { %128 = vsyncadd [#allocation3], 4294967040  ;;  %v132_v0 = vmov 0   ;;  %v36_v1 = vld [vmem:[%s192_s1] sm:$0xf]  ;;  %vm31_vm0 = vcmask 3072   ;;  %v44_v5 = vlaneseq }
   0xe   :  { %106 = vset.pattern.permute.xlu0 %v132_v0  ;;  %v133_v2 = vmov 0.0   ;;  %v134_v3 = vmov 839922192   ;;  %v34_v10 = vld [vmem:[#allocation2] sm:$0xff]  ;;  %v35_v11 = vld [vmem:[#allocation2 + $0x8] sm:$0xff]  ;;  %vm58_vm1 = vcmask 1043456  }
   0xf   :  { %39 = vperm.xlu0 %106, %v36_v1   ;;  %32 = vst.msk [vmem:[%s193_s2] sm:$0xf] %vm31_vm0, %v133_v2  ;;  %33 = vst.msk [vmem:[%s194_s3] sm:$0xf] %vm31_vm0, %v133_v2  ;;  %v42_v4 = vunpack.c.l.s4 %v134_v3  ;;  %v45_v7 = vshrl.u32 %v44_v5, 7 }
  0x11   :  { %v43_v6 = vunpack.c.0.s8 %v42_v4 }
  0x13   :  { %v46_v8 = vsub.s32 %v43_v6, %v45_v7 }
  0x16   :  { %v51_v35 = vld [vmem:[%s193_s2] sm:$0xf] }
  0x17   :  { %v71_v38 = vld [vmem:[%s194_s3] sm:$0xf] }
  0x8a   :  { %v40_v9 = vpop.permute.xlu0 %39 }
  0x8b   :  { %v47_v12 = vrot.slane %v40_v9, %v46_v8 }
  0x8d   :  { %v49_v13 = vsub.f32 %v34_v10, %v47_v12  ;;  %v50_v14 = vsub.f32 %v35_v11, %v47_v12 }
  0x8f   :  { %v54_v15 = vcombine.high %v49_v13, %v49_v13  ;;  %v72_v16 = vmul.f32 %v49_v13, %v49_v13  ;;  %v73_v17 = vmul.f32 %v50_v14, %v50_v14  ;;  %v55_v18 = vcombine.high %v50_v14, %v50_v14 }
  0x90   :  { %v59_v19 = vsel %vm58_vm1, %v49_v13, 0.0  ;;  %v62_v23 = vsel %vm58_vm1, %v50_v14, 0.0 }
  0x91   :  { %v60_v20 = vsel %vm58_vm1, %v54_v15, 0.0  ;;  %v76_v22 = vcombine.high %v72_v16, %v72_v16  ;;  %v77_v25 = vcombine.high %v73_v17, %v73_v17  ;;  %v80_v26 = vsel %vm58_vm1, %v72_v16, 0.0 }
  0x92   :  { %v61_v21 = vadd.f32 %v60_v20, %v59_v19  ;;  %v64_v28 = vsel %vm58_vm1, %v55_v18, 0.0  ;;  %v83_v31 = vsel %vm58_vm1, %v73_v17, 0.0 }
  0x93   :  { %v81_v27 = vsel %vm58_vm1, %v76_v22, 0.0  ;;  %v85_v33 = vsel %vm58_vm1, %v77_v25, 0.0 }
  0x94   :  { %v63_v24 = vadd.f32 %v62_v23, %v61_v21  ;;  %v82_v29 = vadd.f32 %v81_v27, %v80_v26 }
  0x96   :  { %v65_v30 = vadd.f32 %v64_v28, %v63_v24  ;;  %v84_v32 = vadd.f32 %v83_v31, %v82_v29 }
  0x98   :  { %66 = vadd.xlane.f32.xlu0 %v65_v30  ;;  %v86_v34 = vadd.f32 %v85_v33, %v84_v32 }
  0x9a   :  { %87 = vadd.xlane.f32.xlu1 %v86_v34 }
 0x121   :  { %v67_v36 = vpop.xlane.xlu0 %66 }
 0x122   :  { %v68_v37 = vadd.f32 %v67_v36, %v51_v35 }
 0x123   :  { %v88_v39 = vpop.xlane.xlu1 %87 }
 0x124   :  { %70 = vst.msk [vmem:[%s193_s2] sm:$0xf] %vm31_vm0, %v68_v37  ;;  %v89_v40 = vadd.f32 %v88_v39, %v71_v38 }
 0x126   :  { %90 = vst.msk [vmem:[%s194_s3] sm:$0xf] %vm31_vm0, %v89_v40 }
 0x127   :  { %99 = vsyncpa [#allocation3], 1 }

</bundles_post_ra>
